<compile_context>
chip_gen: v5e
topology: v5e:2x2
jax: 0.10.0
libtpu: 0.0.40
codegen_flags: <defaults>
</compile_context>

<pallas_src>
import math

import jax
import jax.numpy as jnp
from jax.experimental import pallas as pl
from jax.experimental.pallas import tpu as pltpu


def _round_up(x, m):
    return (x + m - 1) // m * m


# ----------------------------------------------------------------------------
# Kernels
# ----------------------------------------------------------------------------
def _fused_mlp_kernel(x_ref, w_ref, b1_ref, w2_ref, b2_ref, o_ref):
    """out = LeakyReLU_0.1(sin(x @ w + b1)) @ w2 + b2 on one (tm, E) row tile."""
    h = jnp.dot(x_ref[...], w_ref[...], preferred_element_type=jnp.float32)
    h = h + b1_ref[...]
    h = jnp.sin(h)                      # EUP; keep f32 (v5e has no bf16 VPU/EUP)
    h = jnp.maximum(h, 0.1 * h)         # LeakyReLU(0.1): slope<1 -> max(h, 0.1h)
    out = jnp.dot(h.astype(w2_ref.dtype), w2_ref[...],
                  preferred_element_type=jnp.float32) + b2_ref[...]
    o_ref[...] = out.astype(o_ref.dtype)


def _fused_mlp_ktiled_kernel(x_ref, w_ref, b1_ref, w2_ref, b2_ref, o_ref, acc_ref):
    """K-tiled variant: accumulate x@w over the K grid axis, finalize at last k."""
    k = pl.program_id(1)

    @pl.when(k == 0)
    def _():
        acc_ref[...] = jnp.zeros_like(acc_ref)

    acc_ref[...] += jnp.dot(x_ref[...], w_ref[...],
                            preferred_element_type=jnp.float32)

    @pl.when(k == pl.num_programs(1) - 1)
    def _():
        h = acc_ref[...] + b1_ref[...]
        h = jnp.sin(h)
        h = jnp.maximum(h, 0.1 * h)
        out = jnp.dot(h.astype(w2_ref.dtype), w2_ref[...],
                      preferred_element_type=jnp.float32) + b2_ref[...]
        o_ref[...] = out.astype(o_ref.dtype)


def _mix_kernel(x_ref, w_ref, o_ref):
    """y_r = x_r @ w_eff^T on one (tr, T) row tile (general E % T != 0 path)."""
    o_ref[...] = jnp.dot(x_ref[...], w_ref[...],
                         preferred_element_type=jnp.float32).astype(o_ref.dtype)


# ----------------------------------------------------------------------------
# Wrapper helpers
# ----------------------------------------------------------------------------
_TPU_VMEM_LIMIT_CACHE = None
_SINGLE_BUFFER_OK = None   # memo: does this jax build accept pl.Buffered(1)?


def _vmem_limit_bytes():
    """Generation-aware scoped-VMEM limit (~96 MiB on v5e/v6e, ~48 MiB on v7x)."""
    global _TPU_VMEM_LIMIT_CACHE
    if _TPU_VMEM_LIMIT_CACHE is None:
        cap = None
        try:
            cap = getattr(pltpu.get_tpu_info(), "vmem_capacity_bytes", None)
        except Exception:
            cap = None
        if not cap:
            cap = 64 * 1024 * 1024               # conservative: fits every gen
        _TPU_VMEM_LIMIT_CACHE = int(min(cap * 3 // 4, 100 * 1024 * 1024))
    return _TPU_VMEM_LIMIT_CACHE


def _weight_spec(shape, single_buffer):
    """BlockSpec for a grid-invariant (weight) operand. With single_buffer the
    operand keeps ONE VMEM buffer instead of the default double-buffer (it never
    changes across grid steps), halving its VMEM footprint."""
    zeros = (0,) * len(shape)
    index_map = lambda *_: zeros
    if single_buffer:
        return pl.BlockSpec(shape, index_map, pipeline_mode=pl.Buffered(1))
    return pl.BlockSpec(shape, index_map)


def _run_with_weight_fallback(run):
    """Try single-buffered weights first; fall back to the default
    double-buffering if this jax/Mosaic build rejects pl.Buffered(1)."""
    global _SINGLE_BUFFER_OK
    if _SINGLE_BUFFER_OK is not False:
        try:
            out = run(True)
            _SINGLE_BUFFER_OK = True
            return out
        except Exception:
            _SINGLE_BUFFER_OK = False
    return run(False)


def _choose_tm(M, block_rows):
    """Row-tile: as large as block_rows allows, multiple of 8, and (when
    possible) small enough that the M grid has >= 2 steps so the 'parallel'
    axis can shard across both v7x TensorCores / overlap DMA with compute."""
    if M <= 8:
        return M
    tm = min(block_rows, M)
    tm = min(tm, max(8, _round_up(pl.cdiv(M, 2), 8)))
    return max(8, tm // 8 * 8)


def _mlp_call(x2, w, prep, *, out_dtype, block_rows, vmem_limit, force_k_tile=None):
    """(M, E) rows -> (M, Fp): fused [x @ w + b1 -> sin -> LeakyReLU -> @ w2 + b2]."""
    M, E = x2.shape
    Fp = prep["w2t_pad"].shape[1]
    w_isz = jnp.dtype(w.dtype).itemsize
    x_isz = jnp.dtype(x2.dtype).itemsize
    o_isz = jnp.dtype(out_dtype).itemsize
    budget = int(vmem_limit * 0.85)
    tm = _choose_tm(M, block_rows)

    # VMEM estimate for the un-K-tiled kernel: single-buffered weights,
    # double-buffered activation tiles, f32 compute temporaries.
    def untiled_bytes(tm_):
        return ((E * E + E * Fp) * w_isz + 2 * (E + Fp) * 4
                + 2 * tm_ * E * x_isz + 2 * tm_ * Fp * o_isz
                + tm_ * (E + Fp) * 4)

    tk = force_k_tile
    if tk is None:
        while tm > 8 and untiled_bytes(tm) > budget:
            tm = max(8, (tm // 2) // 8 * 8)
        if untiled_bytes(tm) > budget and E % 128 == 0:
            # Resident E x E weight too big for this chip's VMEM (e.g. v7x at
            # large E): switch to the K-tiled variant.
            for cand in (512, 256, 128):
                if E % cand == 0:
                    tk = cand
                    break

    if tk is not None:
        assert E % tk == 0 and tk % 128 == 0, (E, tk)

        def ktiled_bytes(tm_):
            return (E * Fp * w_isz + 2 * tk * E * w_isz + 2 * (E + Fp) * 4
                    + 2 * tm_ * tk * x_isz + 2 * tm_ * Fp * o_isz
                    + tm_ * E * 4 + tm_ * Fp * 4)

        while tm > 8 and ktiled_bytes(tm) > budget:
            tm = max(8, (tm // 2) // 8 * 8)

    grid_m = pl.cdiv(M, tm)
    args = (x2, w, prep["b1"], prep["w2t_pad"], prep["b2_pad"])

    def run(single_buf):
        if tk is None:
            return pl.pallas_call(
                _fused_mlp_kernel,
                out_shape=jax.ShapeDtypeStruct((M, Fp), out_dtype),
                grid=(grid_m,),
                in_specs=[
                    pl.BlockSpec((tm, E), lambda i: (i, 0)),
                    _weight_spec((E, E), single_buf),
                    _weight_spec((1, E), single_buf),
                    _weight_spec((E, Fp), single_buf),
                    _weight_spec((1, Fp), single_buf),
                ],
                out_specs=pl.BlockSpec((tm, Fp), lambda i: (i, 0)),
                compiler_params=pltpu.CompilerParams(
                    dimension_semantics=("parallel",),
                    vmem_limit_bytes=vmem_limit),
            )(*args)
        return pl.pallas_call(
            _fused_mlp_ktiled_kernel,
            out_shape=jax.ShapeDtypeStruct((M, Fp), out_dtype),
            grid=(grid_m, E // tk),
            in_specs=[
                pl.BlockSpec((tm, tk), lambda i, k: (i, k)),
                pl.BlockSpec((tk, E), lambda i, k: (k, 0)),
                _weight_spec((1, E), single_buf),
                _weight_spec((E, Fp), single_buf),
                _weight_spec((1, Fp), single_buf),
            ],
            out_specs=pl.BlockSpec((tm, Fp), lambda i, k: (i, 0)),
            scratch_shapes=[pltpu.VMEM((tm, E), jnp.float32)],
            compiler_params=pltpu.CompilerParams(
                dimension_semantics=("parallel", "arbitrary"),
                vmem_limit_bytes=vmem_limit),
        )(*args)

    return _run_with_weight_fallback(run)


def _mix_call(xr, w_eff_t, *, out_dtype, block_rows, vmem_limit):
    """(B*E, T) @ w_eff^T -> (B*E, T), tiled over rows (general path only)."""
    R, T = xr.shape
    tr = _choose_tm(R, block_rows)
    grid_r = pl.cdiv(R, tr)

    def run(single_buf):
        return pl.pallas_call(
            _mix_kernel,
            out_shape=jax.ShapeDtypeStruct((R, T), out_dtype),
            grid=(grid_r,),
            in_specs=[pl.BlockSpec((tr, T), lambda i: (i, 0)),
                      _weight_spec((T, T), single_buf)],
            out_specs=pl.BlockSpec((tr, T), lambda i: (i, 0)),
            compiler_params=pltpu.CompilerParams(
                dimension_semantics=("parallel",),
                vmem_limit_bytes=vmem_limit),
        )(xr, w_eff_t)

    return _run_with_weight_fallback(run)


# ----------------------------------------------------------------------------
# Public API
# ----------------------------------------------------------------------------
def prepare_params(params, seq, *, matmul_dtype=jnp.float32, lane_pad=128):
    """One-time weight prep hoisted out of the forward path.

    matmul_dtype=jnp.bfloat16 is recommended on v5e, v6e and v7x (the MXU is
    bf16-native on all of them); accumulation and sin/LeakyReLU stay f32.
    """
    T = seq
    w_eff = params["tri_W"][:T, :T] * params["fft_w"][:T, :T]             # (T, T)
    w1, b1 = params["w1"], params["b1"]                                    # (E,E), (E,)
    w2, b2 = params["w2"], params["b2"]                                    # (F,E), (F,)
    E, F = w1.shape[0], w2.shape[0]
    # Lane-dense output stores: pad F up to a multiple of 128 (skipped when it
    # already is; the wrapper slices the padding back off).
    Fp = F if F % lane_pad == 0 else _round_up(F, lane_pad)
    w2t_pad = jnp.zeros((E, Fp), matmul_dtype).at[:, :F].set(w2.T.astype(matmul_dtype))
    b2_pad = jnp.zeros((1, Fp), jnp.float32).at[:, :F].set(b2.astype(jnp.float32))
    # TODO(synk): if deployment keeps E < 128 (demo E=32 uses 32/128 lanes and a
    # sliver of the MXU), zero-pad E to 128 here (Wc/w1t rows+cols, w2 rows) and
    # pad x columns in the wrapper; the kernel targets E >= 128 for efficiency.
    prep = {
        "seq": T, "f_out": F, "matmul_dtype": matmul_dtype,
        "b1": b1.reshape(1, E).astype(jnp.float32),
        "w2t_pad": w2t_pad, "b2_pad": b2_pad,
        "wc": None, "w_eff_t": None, "w1t": None,
    }
    if E % T == 0:
        # Fold (fft-mix o flat-regroup o Linear1) into one (E, E) matrix Wc
        # (computed in f32, cast once):
        #   h[t, :] = x[t, :] @ Wc + b1   with
        #   Wc[q*T + k, e] = sum_r w_eff[r, k] * W1[e, q*T + r]
        c = E // T
        w1t3 = w1.T.reshape(c, T, E)
        wc = jnp.einsum("rk,qre->qke", w_eff, w1t3).reshape(E, E)
        prep["wc"] = wc.astype(matmul_dtype)
    else:
        prep["w_eff_t"] = w_eff.T.astype(matmul_dtype)
        prep["w1t"] = w1.T.astype(matmul_dtype)
    return prep


def fourier_transform(x, prep, *, block_rows=None, force_k_tile=None):
    """Pallas implementation of FourierTransform.forward."""
    B, T, E = x.shape
    assert T == prep["seq"]
    F = prep["f_out"]
    Fp = prep["w2t_pad"].shape[1]
    mm_dtype = prep["matmul_dtype"]
    vmem_limit = _vmem_limit_bytes()
    if block_rows is None:
        # Bigger row tiles where VMEM allows (v5e/v6e: 128 MiB; v7x: 64 MiB).
        block_rows = 512 if vmem_limit >= (60 << 20) else 256

    if prep["wc"] is not None:
        # Fast path (E % T == 0): fft-mix + flat regroup + Linear1 fold into one
        # (E, E) matrix -> a plain 2-matmul MLP over (B*T, E) rows.
        x2 = x.reshape(B * T, E)                 # contiguous: free reinterpretation
        if x2.dtype != mm_dtype:
            x2 = x2.astype(mm_dtype)             # cast once here, not per grid step
        out2 = _mlp_call(x2, prep["wc"], prep, out_dtype=x.dtype,
                         block_rows=block_rows, vmem_limit=vmem_limit,
                         force_k_tile=force_k_tile)
    else:
        # General path (E % T != 0): tiled mix kernel over (B*E, T) rows, a free
        # wrapper-side flat reinterpretation to (B*T, E), then the fused MLP.
        # TODO(synk): fuse the two calls once a relayout-free per-tile regroup of
        # the (E, T) <-> (T, E) flats is expressible in Mosaic.
        xr = x.reshape(B * E, T)
        if xr.dtype != mm_dtype:
            xr = xr.astype(mm_dtype)
        y_r = _mix_call(xr, prep["w_eff_t"], out_dtype=mm_dtype,
                        block_rows=block_rows, vmem_limit=vmem_limit)
        y = y_r.reshape(B * T, E)                # contiguous: free reinterpretation
        out2 = _mlp_call(y, prep["w1t"], prep, out_dtype=x.dtype,
                         block_rows=block_rows, vmem_limit=vmem_limit,
                         force_k_tile=force_k_tile)

    out = out2.reshape(B, T, Fp)
    return out if Fp == F else out[..., :F]


def reference(x, params):
    """Pure-JAX reference of the PyTorch forward, for validation."""
    B, T, E = x.shape
    w_eff = params["tri_W"][:T, :T] * params["fft_w"][:T, :T]
    x_r = x.reshape(B, E, T)
    y_r = jnp.einsum("bet,st->bes", x_r, w_eff)      # F.linear(x, w_eff)
    y = y_r.reshape(B, T, E)
    h = y @ params["w1"].T + params["b1"]
    h = jnp.sin(h)
    h = jnp.where(h >= 0, h, 0.1 * h)
    return h @ params["w2"].T + params["b2"]


def init_params(key, seq, hidden_dim, f_out):
    """Deterministic PyTorch-Linear-style init (uniform +/- 1/sqrt(fan_in))."""
    k = jax.random.split(key, 5)
    bf = 1.0 / math.sqrt(seq)
    bh = 1.0 / math.sqrt(hidden_dim)
    fft_w = jax.random.uniform(k[0], (seq, seq), jnp.float32, -bf, bf)
    w1 = jax.random.uniform(k[1], (hidden_dim, hidden_dim), jnp.float32, -bh, bh)
    b1 = jax.random.uniform(k[2], (hidden_dim,), jnp.float32, -bh, bh)
    w2 = jax.random.uniform(k[3], (f_out, hidden_dim), jnp.float32, -bh, bh)
    b2 = jax.random.uniform(k[4], (f_out,), jnp.float32, -bh, bh)
    tri = jnp.tril(jnp.ones((seq, seq), jnp.float32))
    tri_W = tri / tri.sum(axis=1, keepdims=True)
    return {"fft_w": fft_w, "tri_W": tri_W, "w1": w1, "b1": b1, "w2": w2, "b2": b2}


if __name__ == "__main__":
    # --- 1) fast path (E % T == 0), f32 matmuls, demo shapes ------------------
    B, seq, hidden_dim, f_out = 2, 8, 32, 16
    kp, kx = jax.random.split(jax.random.PRNGKey(0))
    params = init_params(kp, seq, hidden_dim, f_out)
    x = jax.random.normal(kx, (B, seq, hidden_dim), jnp.float32)
    prep = prepare_params(params, seq, matmul_dtype=jnp.float32)
    out = jax.block_until_ready(fourier_transform(x, prep))
    ref = reference(x, params)
    assert out.shape == (B, seq, f_out), out.shape
    assert jnp.allclose(out, ref, atol=1e-3, rtol=1e-3), float(jnp.max(jnp.abs(out - ref)))

    # --- 2) same shapes, bf16 matmul inputs (recommended on v5e/v6e/v7x) ------
    prep_bf16 = prepare_params(params, seq, matmul_dtype=jnp.bfloat16)
    out_bf16 = jax.block_until_ready(fourier_transform(x, prep_bf16))
    assert jnp.allclose(out_bf16, ref, atol=5e-2, rtol=5e-2), \
        float(jnp.max(jnp.abs(out_bf16 - ref)))

    # --- 3) K-tiled fast path (the large-E / v7x configuration), forced -------
    B3, E3, F3 = 2, 256, 128
    kp3, kx3 = jax.random.split(jax.random.PRNGKey(1))
    params3 = init_params(kp3, seq, E3, F3)
    x3 = jax.random.normal(kx3, (B3, seq, E3), jnp.float32)
    prep3 = prepare_params(params3, seq, matmul_dtype=jnp.float32)
    out3 = jax.block_until_ready(fourier_transform(x3, prep3, force_k_tile=128))
    ref3 = reference(x3, params3)
    assert jnp.allclose(out3, ref3, atol=1e-3, rtol=1e-3), \
        float(jnp.max(jnp.abs(out3 - ref3)))

    # --- 4) general path (E % T != 0), incl. partial / non-divisible M tiles --
    B4, E4, F4 = 3, 20, 16
    kp4, kx4 = jax.random.split(jax.random.PRNGKey(2))
    params4 = init_params(kp4, seq, E4, F4)
    x4 = jax.random.normal(kx4, (B4, seq, E4), jnp.float32)
    prep4 = prepare_params(params4, seq, matmul_dtype=jnp.float32)
    out4 = jax.block_until_ready(fourier_transform(x4, prep4))
    ref4 = reference(x4, params4)
    assert jnp.allclose(out4, ref4, atol=1e-3, rtol=1e-3), \
        float(jnp.max(jnp.abs(out4 - ref4)))

    print("KERNEL_OK")
</pallas_src>

<mosaic_0001>
module attributes {stable_mosaic.version = 11 : i64} {
  func.func @_fused_mlp_kernel(%arg0: i32, %arg1: memref<8x32xf32, #tpu.memory_space<vmem>>, %arg2: memref<32x32xf32, #tpu.memory_space<vmem>>, %arg3: memref<1x32xf32, #tpu.memory_space<vmem>>, %arg4: memref<32x128xf32, #tpu.memory_space<vmem>>, %arg5: memref<1x128xf32, #tpu.memory_space<vmem>>, %arg6: memref<8x128xf32, #tpu.memory_space<vmem>>) attributes {dimension_semantics = [#tpu.dimension_semantics<parallel>], iteration_bounds = array<i64: 2>, scalar_prefetch = 0 : i64, scratch_operands = 0 : i64, tpu.core_type = #tpu.core_type<tc>, window_params = [{transform_indices = @transform_0, window_bounds = array<i64: 8, 32>}, {pipeline_mode = #tpu.pipeline_mode<synchronous>, transform_indices = @transform_1, window_bounds = array<i64: 32, 32>}, {pipeline_mode = #tpu.pipeline_mode<synchronous>, transform_indices = @transform_2, window_bounds = array<i64: 1, 32>}, {pipeline_mode = #tpu.pipeline_mode<synchronous>, transform_indices = @transform_3, window_bounds = array<i64: 32, 128>}, {pipeline_mode = #tpu.pipeline_mode<synchronous>, transform_indices = @transform_4, window_bounds = array<i64: 1, 128>}, {transform_indices = @transform_5, window_bounds = array<i64: 8, 128>}]} {
    %c0 = arith.constant 0 : index
    %c0_0 = arith.constant 0 : index
    %0 = vector.load %arg1[%c0, %c0_0] : memref<8x32xf32, #tpu.memory_space<vmem>>, vector<8x32xf32>
    %c0_1 = arith.constant 0 : index
    %c0_2 = arith.constant 0 : index
    %1 = vector.load %arg2[%c0_1, %c0_2] : memref<32x32xf32, #tpu.memory_space<vmem>>, vector<32x32xf32>
    %cst = arith.constant dense<0.000000e+00> : vector<8x32xf32>
    %2 = tpu.matmul %0, %1, %cst {dimension_numbers = #tpu.dot_dimension_numbers<[1], [0], [0], [1], [0, 0, 1, 1], [], []>} : vector<8x32xf32>, vector<32x32xf32>, vector<8x32xf32> -> vector<8x32xf32>
    %c0_3 = arith.constant 0 : index
    %c0_4 = arith.constant 0 : index
    %3 = vector.load %arg3[%c0_3, %c0_4] : memref<1x32xf32, #tpu.memory_space<vmem>>, vector<1x32xf32>
    %4 = vector.broadcast %3 : vector<1x32xf32> to vector<8x32xf32>
    %5 = arith.addf %2, %4 : vector<8x32xf32>
    %6 = math.sin %5 : vector<8x32xf32>
    %cst_5 = arith.constant 1.000000e-01 : f32
    %7 = vector.broadcast %cst_5 : f32 to vector<8x32xf32>
    %8 = arith.mulf %7, %6 : vector<8x32xf32>
    %9 = arith.maximumf %6, %8 : vector<8x32xf32>
    %c0_6 = arith.constant 0 : index
    %c0_7 = arith.constant 0 : index
    %10 = vector.load %arg4[%c0_6, %c0_7] : memref<32x128xf32, #tpu.memory_space<vmem>>, vector<32x128xf32>
    %cst_8 = arith.constant dense<0.000000e+00> : vector<8x128xf32>
    %11 = tpu.matmul %9, %10, %cst_8 {dimension_numbers = #tpu.dot_dimension_numbers<[1], [0], [0], [1], [0, 0, 1, 1], [], []>} : vector<8x32xf32>, vector<32x128xf32>, vector<8x128xf32> -> vector<8x128xf32>
    %c0_9 = arith.constant 0 : index
    %c0_10 = arith.constant 0 : index
    %12 = vector.load %arg5[%c0_9, %c0_10] : memref<1x128xf32, #tpu.memory_space<vmem>>, vector<1x128xf32>
    %13 = vector.broadcast %12 : vector<1x128xf32> to vector<8x128xf32>
    %14 = arith.addf %11, %13 : vector<8x128xf32>
    %c0_11 = arith.constant 0 : index
    %c0_12 = arith.constant 0 : index
    %15 = vector.load %arg6[%c0_11, %c0_12] : memref<8x128xf32, #tpu.memory_space<vmem>>, vector<8x128xf32>
    tpu.vector_store %arg6[%c0_11, %c0_12], %14 {strides = array<i32>} : memref<8x128xf32, #tpu.memory_space<vmem>>, vector<8x128xf32>,
    return
  }
  func.func @transform_0(%arg0: i32) -> (i32, i32) {
    %c0_i32 = arith.constant 0 : i32
    %c0_i32_0 = arith.constant 0 : i32
    return %arg0, %c0_i32 : i32, i32
  }
  func.func @transform_1(%arg0: i32) -> (i32, i32) {
    %c0_i32 = arith.constant 0 : i32
    %c0_i32_0 = arith.constant 0 : i32
    %c0_i32_1 = arith.constant 0 : i32
    return %c0_i32, %c0_i32_0 : i32, i32
  }
  func.func @transform_2(%arg0: i32) -> (i32, i32) {
    %c0_i32 = arith.constant 0 : i32
    %c0_i32_0 = arith.constant 0 : i32
    %c0_i32_1 = arith.constant 0 : i32
    return %c0_i32, %c0_i32_0 : i32, i32
  }
  func.func @transform_3(%arg0: i32) -> (i32, i32) {
    %c0_i32 = arith.constant 0 : i32
    %c0_i32_0 = arith.constant 0 : i32
    %c0_i32_1 = arith.constant 0 : i32
    return %c0_i32, %c0_i32_0 : i32, i32
  }
  func.func @transform_4(%arg0: i32) -> (i32, i32) {
    %c0_i32 = arith.constant 0 : i32
    %c0_i32_0 = arith.constant 0 : i32
    %c0_i32_1 = arith.constant 0 : i32
    return %c0_i32, %c0_i32_0 : i32, i32
  }
  func.func @transform_5(%arg0: i32) -> (i32, i32) {
    %c0_i32 = arith.constant 0 : i32
    %c0_i32_0 = arith.constant 0 : i32
    return %arg0, %c0_i32 : i32, i32
  }
}

module attributes {stable_mosaic.version = 11 : i64} {
  func.func @_fused_mlp_kernel(%arg0: i32, %arg1: memref<8x32xf32, #tpu.memory_space<vmem>>, %arg2: memref<32x32xf32, #tpu.memory_space<vmem>>, %arg3: memref<1x32xf32, #tpu.memory_space<vmem>>, %arg4: memref<32x128xf32, #tpu.memory_space<vmem>>, %arg5: memref<1x128xf32, #tpu.memory_space<vmem>>, %arg6: memref<8x128xf32, #tpu.memory_space<vmem>>) attributes {dimension_semantics = [#tpu.dimension_semantics<parallel>], iteration_bounds = array<i64: 2>, scalar_prefetch = 0 : i64, scratch_operands = 0 : i64, tpu.core_type = #tpu.core_type<tc>, window_params = [{transform_indices = @transform_0, window_bounds = array<i64: 8, 32>}, {pipeline_mode = #tpu.pipeline_mode<synchronous>, transform_indices = @transform_1, window_bounds = array<i64: 32, 32>}, {pipeline_mode = #tpu.pipeline_mode<synchronous>, transform_indices = @transform_2, window_bounds = array<i64: 1, 32>}, {pipeline_mode = #tpu.pipeline_mode<synchronous>, transform_indices = @transform_3, window_bounds = array<i64: 32, 128>}, {pipeline_mode = #tpu.pipeline_mode<synchronous>, transform_indices = @transform_4, window_bounds = array<i64: 1, 128>}, {transform_indices = @transform_5, window_bounds = array<i64: 8, 128>}]} {
    %c0 = arith.constant 0 : index
    %c0_0 = arith.constant 0 : index
    %0 = vector.load %arg1[%c0, %c0_0] : memref<8x32xf32, #tpu.memory_space<vmem>>, vector<8x32xf32>
    %c0_1 = arith.constant 0 : index
    %c0_2 = arith.constant 0 : index
    %1 = vector.load %arg2[%c0_1, %c0_2] : memref<32x32xf32, #tpu.memory_space<vmem>>, vector<32x32xf32>
    %cst = arith.constant dense<0.000000e+00> : vector<8x32xf32>
    %2 = tpu.matmul %0, %1, %cst {dimension_numbers = #tpu.dot_dimension_numbers<[1], [0], [0], [1], [0, 0, 1, 1], [], []>} : vector<8x32xf32>, vector<32x32xf32>, vector<8x32xf32> -> vector<8x32xf32>
    %c0_3 = arith.constant 0 : index
    %c0_4 = arith.constant 0 : index
    %3 = vector.load %arg3[%c0_3, %c0_4] : memref<1x32xf32, #tpu.memory_space<vmem>>, vector<1x32xf32>
    %4 = vector.broadcast %3 : vector<1x32xf32> to vector<8x32xf32>
    %5 = arith.addf %2, %4 : vector<8x32xf32>
    %6 = math.sin %5 : vector<8x32xf32>
    %cst_5 = arith.constant 1.000000e-01 : f32
    %7 = vector.broadcast %cst_5 : f32 to vector<8x32xf32>
    %8 = arith.mulf %7, %6 : vector<8x32xf32>
    %9 = arith.maximumf %6, %8 : vector<8x32xf32>
    %c0_6 = arith.constant 0 : index
    %c0_7 = arith.constant 0 : index
    %10 = vector.load %arg4[%c0_6, %c0_7] : memref<32x128xf32, #tpu.memory_space<vmem>>, vector<32x128xf32>
    %cst_8 = arith.constant dense<0.000000e+00> : vector<8x128xf32>
    %11 = tpu.matmul %9, %10, %cst_8 {dimension_numbers = #tpu.dot_dimension_numbers<[1], [0], [0], [1], [0, 0, 1, 1], [], []>} : vector<8x32xf32>, vector<32x128xf32>, vector<8x128xf32> -> vector<8x128xf32>
    %c0_9 = arith.constant 0 : index
    %c0_10 = arith.constant 0 : index
    %12 = vector.load %arg5[%c0_9, %c0_10] : memref<1x128xf32, #tpu.memory_space<vmem>>, vector<1x128xf32>
    %13 = vector.broadcast %12 : vector<1x128xf32> to vector<8x128xf32>
    %14 = arith.addf %11, %13 : vector<8x128xf32>
    %c0_11 = arith.constant 0 : index
    %c0_12 = arith.constant 0 : index
    %15 = vector.load %arg6[%c0_11, %c0_12] : memref<8x128xf32, #tpu.memory_space<vmem>>, vector<8x128xf32>
    tpu.vector_store %arg6[%c0_11, %c0_12], %14 {strides = array<i32>} : memref<8x128xf32, #tpu.memory_space<vmem>>, vector<8x128xf32>,
    return
  }
  func.func @transform_0(%arg0: i32) -> (i32, i32) {
    %c0_i32 = arith.constant 0 : i32
    %c0_i32_0 = arith.constant 0 : i32
    return %arg0, %c0_i32 : i32, i32
  }
  func.func @transform_1(%arg0: i32) -> (i32, i32) {
    %c0_i32 = arith.constant 0 : i32
    %c0_i32_0 = arith.constant 0 : i32
    %c0_i32_1 = arith.constant 0 : i32
    return %c0_i32, %c0_i32_0 : i32, i32
  }
  func.func @transform_2(%arg0: i32) -> (i32, i32) {
    %c0_i32 = arith.constant 0 : i32
    %c0_i32_0 = arith.constant 0 : i32
    %c0_i32_1 = arith.constant 0 : i32
    return %c0_i32, %c0_i32_0 : i32, i32
  }
  func.func @transform_3(%arg0: i32) -> (i32, i32) {
    %c0_i32 = arith.constant 0 : i32
    %c0_i32_0 = arith.constant 0 : i32
    %c0_i32_1 = arith.constant 0 : i32
    return %c0_i32, %c0_i32_0 : i32, i32
  }
  func.func @transform_4(%arg0: i32) -> (i32, i32) {
    %c0_i32 = arith.constant 0 : i32
    %c0_i32_0 = arith.constant 0 : i32
    %c0_i32_1 = arith.constant 0 : i32
    return %c0_i32, %c0_i32_0 : i32, i32
  }
  func.func @transform_5(%arg0: i32) -> (i32, i32) {
    %c0_i32 = arith.constant 0 : i32
    %c0_i32_0 = arith.constant 0 : i32
    return %arg0, %c0_i32 : i32, i32
  }
}

</mosaic_0001>

<bundles_post_ra>
// kernel: tpu_custom_call.1
= control target key start
LH: loop header
LB: loop body
LE: loop exit
PB: predicated region body
PF: predicated region fallthrough
CT: control target
= control target key end

     0   :  { %10 = vsyncpa [#allocation3], 0  ;;  %s1117_s0 = inlined_call_operand.hbm [shape: f32[16,32], index: 0, kind: input, shape index: {}]   ;;  %s1118_s1 = inlined_call_operand.hbm [shape: f32[32,32], index: 1, kind: input, shape index: {}]   ;;  %s1119_s2 = inlined_call_operand.vmem [shape: f32[1,32], index: 2, kind: input, shape index: {}]   ;;  %s1120_s3 = inlined_call_operand.hbm [shape: f32[32,128], index: 3, kind: input, shape index: {}]   ;;  %s1121_s4 = inlined_call_operand.vmem [shape: f32[1,128], index: 4, kind: input, shape index: {}]   ;;  %s1122_s5 = inlined_call_operand.hbm [shape: f32[16,128], index: 5, kind: output, shape index: {}]  }
   0x1   :  { %12 = vsyncpa [#allocation3 + $0x1], 0 }
   0x2   :  { %13 = vsyncpa [#allocation6], 0 }
   0x3   :  { %14 = vsyncpa [#allocation4], 0 }
   0x4   :  { %16 = vsyncpa [#allocation4 + $0x1], 0  ;;  %s904_s18 = smov 0   ;;  %s906_s19 = smov 0  }
   0x5   :  { %s908_s20 = smov 0   ;;  %s910_s21 = smov 0  }
   0x6 LB: > { %s174_s24 = sshll.u32 %s1118_s1, 4  ;;  %s928_s25 = sadd.s32 4294967295, %s861_s21   ;;  %s861_s21 = sphi %s910_s21, %s1133_s21   ;;  %s857_s20 = sphi %s908_s20, %s1132_s20   ;;  %s853_s19 = sphi %s906_s19, %s1131_s19   ;;  %s849_s18 = sphi %s904_s18, %s1130_s18   ;;  %s175_s24 = int_to_ptr.hbm [resolvable:$true] %s174_s24 }
   0x7   : > { %p603_p0 = scmp.ge.s32.totalorder %s861_s21, 1  ;;  %p43_p1 = scmp.eq.s32.totalorder %s928_s25, 0 }
   0x8   : > { %p163_p2 = scmp.lt.s32.totalorder %s861_s21, 3  ;;  %s863_s27 = smov [#allocation5]  }
   0x9   : > { %s176_s28 = sshll.u32 %s863_s27, 4  ;;  %s191_s6 = sshll.u32 %s1120_s3, 4  ;;  %s177_s28 = int_to_ptr.vmem [resolvable:$true] %s176_s28  ;;  %s192_s6 = int_to_ptr.hbm [resolvable:$true] %s191_s6 }
   0xa   : > { %p933_p3 = pnand %p603_p0, %p163_p2  ;;  %s864_s7 = smov [#allocation7]  }
   0xb   : > { %s193_s8 = sshll.u32 %s864_s7, 4  ;;  %s865_s9 = smov 128   ;;  %s194_s8 = int_to_ptr.vmem [resolvable:$true] %s193_s8 }
   0xc   : > { %p635_p4 = pneg %p933_p3  ;;  %s866_s10 = smov 8  }
   0xd   : > { %s602_s11 = sadd.s32 4294967294, %s861_s21   ;;  %s947_s12 = sadd.s32 1, %s861_s21  }
   0xe   : > { %p636_p6 = pnand %p635_p4, %p43_p1  ;;  %s26_s13 = ssub.s32 %s861_s21, %s947_s12 }
   0xf   : > { %s29_s14 = sadd.s32 1, %s857_s20  ;;  %p27_p7 = scmp.eq.s32.totalorder %s26_s13, 0 }
  0x10   : > { %638 = dma.hbm_to_vmem [thread:$0]  (!%p636_p6), %s175_s24, 512, %s177_s28, [#allocation6], %s865_s9, %s865_s9, %s866_s10  }
  0x11   : > { %641 = dma.hbm_to_vmem [thread:$0]  (!%p636_p6), %s192_s6, 512, %s194_s8, [#allocation6], %s865_s9, %s865_s9, %s866_s10  }
  0x12   : > { %p36_p8 = scmp.ne.s32.totalorder %s857_s20, %s853_s19  ;;  %p37_p9 = scmp.eq.s32.totalorder %s861_s21, 0 }
  0x13   : > { %p42_p10 = scmp.ne.s32.totalorder %s853_s19, %s849_s18  ;;  %p150_p13 = scmp.eq.s32.totalorder %s928_s25, 1 }
  0x14   : > { %s958_s15 = scalar_select %p27_p7, %s857_s20, %s29_s14  }
  0x15   : > { %p960_p11 = por %p37_p9, %p36_p8  ;;  %p966_p12 = por %p43_p1, %p42_p10 }
  0x16   : > { %p156_p0 = scmp.eq.s32.totalorder %s602_s11, 1  ;;  %p652_p2 = scmp.lt.s32.totalorder %s861_s21, 2 }
  0x17   : > { %s210_s22 = sand.u32 1, %s857_s20   ;;  %p973_p4 = por %p150_p13, %p36_p8 }
  0x18   : > { %p977_p6 = por %p156_p0, %p42_p10  ;;  %s607_s27 = sshll.u32 %s210_s22, 3 }
  0x19   : > { %s608_s28 = sshll.u32 %s861_s21, 3  ;;  %s214_s7 = scalar_lea.vmem [#allocation2], %s607_s27 }
  0x1a   : > { %s218_s6 = scalar_lea.hbm %s1117_s0, %s608_s28  ;;  %s222_s8 = sshll.u32 %s214_s7, 4  ;;  %s223_s8 = int_to_ptr.vmem [resolvable:$true] %s222_s8 }
  0x1b   : > { %s220_s9 = sshll.u32 %s218_s6, 4  ;;  %p987_p7 = pnand %p652_p2, %p960_p11  ;;  %s221_s9 = int_to_ptr.hbm [resolvable:$true] %s220_s9 }
  0x1c   : > { %s211_s11 = scalar_lea.sflag [#allocation3], %s210_s22  ;;  %s761_s13 = sshra.s32 %s221_s9, 4  ;;  %s762_s13 = int_to_ptr.hbm [resolvable:$true] %s761_s13 }
  0x1d   : > { %s763_s14 = scalar_lea.hbm %s762_s13, 8  ;;  %p765_p9 = pneg %p987_p7 }
  0x1e   : > { %p764_p8 = scmp.ne.s32.totalorder %s762_s13, %s763_s14  ;;  %s768_s29 = scalar_lea.hbm %s1117_s0, 16 }
  0x1f   : > { %p769_p11 = scmp.lt.s32.totalorder %s762_s13, %s1117_s0  ;;  %p770_p0 = scmp.lt.s32.totalorder %s768_s29, %s763_s14 }
  0x20   : > { %p766_p10 = pnand %p765_p9, %p764_p8 }
  0x21   : > { %p771_p2 = por %p770_p0, %p769_p11 }
  0x22   : > { %p767_p13 = pneg %p766_p10 }
  0x24   : > { %p772_p5 = pnand %p771_p2, %p767_p13 }
  0x26   : > { %775 = shalt.err (!%p772_p5)
}
  0x27   : > { %645 = dma.hbm_to_vmem [thread:$0]  (!%p987_p7), %s221_s9, 128, %s223_s8, %s211_s11  }
  0x28   : > { %231 = sbr.rel (%p933_p3) target bundleno = 415 (0x19f), region = 40  ;;  %s1004_s22 = sand.u32 (!%p933_p3), 1, %s853_s19  }
  0x29   : > { %s610_s6 = sshll.u32 (!%p933_p3), %s1004_s22, 3  ;;  %s234_s7 = scalar_lea.sflag (!%p933_p3), [#allocation3], %s1004_s22 }
  0x2a   : > { %s237_s13 = scalar_lea.vmem (!%p933_p3), [#allocation2], %s610_s6 }
  0x2d   : > { %836 = dma.done.wait (%p966_p12), %s234_s7, 128  }
  0x2e   : > { %838 = vsyncadd (%p966_p12), %s234_s7, 4294967168 }
  0x2f   : > { %840 = dma.done.wait (%p43_p1), [#allocation6], 1024  }
  0x30   : > { %842 = vsyncadd (%p43_p1), [#allocation6], 4294966272  ;;  %v279_v0 = vld [vmem:[#allocation5 + $0x18] sm:$0xff]  ;;  %v278_v1 = vld [vmem:[#allocation5 + $0x10] sm:$0xff]  ;;  %vm284_vm0 = vcmask 261120   ;;  %s620_s8 = sshll.u32 %s928_s25, 3 }
  0x31   : > { %300 = vmatpush.msra.mxu0 %v279_v0  ;;  %v277_v2 = vld [vmem:[#allocation5 + $0x8] sm:$0xff]  ;;  %v276_v3 = vld [vmem:[#allocation5] sm:$0xff]  ;;  %v275_v4 = vld [vmem:[%s237_s13] sm:$0xff]  ;;  %v867_v19 = vmov 683565275   ;;  %s508_s11 = scalar_lea.hbm %s1122_s5, %s620_s8  ;;  %s274_s28 = scalar_lea.vmem [#allocation8], %s610_s6 }
  0x32   : > { %v699_v5 = vld [vmem:[%s1119_s2] ss:$0 sm:$0xff]  ;;  %v868_v21 = vmov 2475754826   ;;  %v869_v24 = vmov 2131351028  }
  0x33   : > { %301 = vmatpush.msra.mxu0 %v278_v1  ;;  %v870_v27 = vmov 2102212464   ;;  %v871_v30 = vmov 920167782   ;;  %v872_v33 = vmov 1326507024  }
  0x34   : > { %s510_s29 = sshll.u32 %s274_s28, 4  ;;  %s512_s30 = sshll.u32 %s508_s11, 4  ;;  %s511_s29 = int_to_ptr.vmem [resolvable:$true] %s510_s29  ;;  %s513_s30 = int_to_ptr.hbm [resolvable:$true] %s512_s30 }
  0x35   : > { %302 = vmatpush.msra.mxu0 %v277_v2  ;;  %s498_s16 = scalar_lea.sflag [#allocation4], %s1004_s22  ;;  %s805_s25 = sshra.s32 %s513_s30, 4  ;;  %s806_s25 = int_to_ptr.hbm [resolvable:$true] %s805_s25 }
  0x36   : > { %s807_s7 = scalar_lea.hbm %s806_s25, 8  ;;  %s811_s17 = scalar_lea.hbm %s1122_s5, 16 }
  0x37   : > { %303 = vmatpush.msra.mxu0 %v276_v3  ;;  %v873_v3 = vmov 0   ;;  %p808_p1 = scmp.ne.s32.totalorder %s806_s25, %s807_s7  ;;  %p812_p12 = scmp.lt.s32.totalorder %s806_s25, %s1122_s5 }
  0x38   : > { %614 = vmatmul.msk.f32.vlgmr.msra.gmra.mxu0 %vm284_vm0, %v275_v4  ;;  %p813_p7 = scmp.lt.s32.totalorder %s811_s17, %s807_s7 }
  0x39   : > { %p809_p3 = pnand %p808_p1, %p973_p4 }
  0x3a   : > { %p814_p8 = por %p813_p7, %p812_p12 }
  0x3b   : > { %p810_p5 = pneg %p809_p3 }
  0x3d   : > { %p815_p9 = pnand %p814_p8, %p810_p5 }
  0xb5   : > { %v305_v6 = vpop.f32.mrf.mxu0 }
  0xb6   : > { %v1022_v7 = vadd.f32 %v699_v5, %v305_v6 }
  0xb8   : > { %v311_v8 = vand.u32 2139095040, %v1022_v7  ;;  %v308_v11 = vand.u32 2147483647, %v1022_v7  ;;  %vm310_vm13 = vcmp.lt.s32.totalorder %v1022_v7, 0 }
  0xba   : > { %v312_v9 = vshrl.u32 %v311_v8, 23  ;;  %v315_v13 = vand.u32 8388607, %v308_v11  ;;  %vm309_vm14 = vcmp.le.f32.partialorder %v308_v11, 0.7853982 }
  0xbc   : > { %v615_v10 = vadd.s32 4294967169, %v312_v9  ;;  %v316_v17 = vor.u32 8388608, %v315_v13 }
  0xbe   : > { %v318_v12 = vadd.s32 1, %v615_v10  ;;  %v1039_v40 = vshll.u32 %v316_v17, 8 }
  0xc0   : > { %vm319_vm1 = vcmp.gt.s32.totalorder %v318_v12, 0  ;;  %v357_v49 = vand.u32 65535, %v1039_v40  ;;  %v358_v50 = vshrl.u32 %v1039_v40, 16 }
  0xc1   : > { %v320_v14 = vsel %vm319_vm1, %v318_v12, 0 }
  0xc2   : > { %v322_v15 = vand.u32 31, %v320_v14  ;;  %v1030_v18 = vshrl.u32 %v320_v14, 5 }
  0xc4   : > { %v1028_v16 = vsub.s32 32, %v322_v15  ;;  %v325_v20 = vshll.u32 %v867_v19, %v322_v15  ;;  %v328_v22 = vshll.u32 %v868_v21, %v322_v15  ;;  %v331_v26 = vshll.u32 %v869_v24, %v322_v15 }
  0xc5   : > { %v334_v29 = vshll.u32 %v870_v27, %v322_v15  ;;  %v337_v32 = vshll.u32 %v871_v30, %v322_v15  ;;  %vm340_vm2 = vcmp.lt.s32.totalorder %v1030_v18, 1  ;;  %vm343_vm3 = vcmp.lt.s32.totalorder %v1030_v18, 4 }
  0xc6   : > { %v326_v23 = vshrl.u32 %v868_v21, %v1028_v16  ;;  %v329_v25 = vshrl.u32 %v869_v24, %v1028_v16  ;;  %v332_v28 = vshrl.u32 %v870_v27, %v1028_v16  ;;  %v335_v31 = vshrl.u32 %v871_v30, %v1028_v16 }
  0xc7   : > { %v338_v34 = vshrl.u32 %v872_v33, %v1028_v16  ;;  %vm342_vm4 = vcmp.lt.s32.totalorder %v1030_v18, 3  ;;  %vm341_vm5 = vcmp.lt.s32.totalorder %v1030_v18, 2  ;;  %v324_v14 = vshrl.u32 %v867_v19, %v1028_v16 }
  0xc8   : > { %v327_v35 = vor.u32 %v326_v23, %v325_v20  ;;  %v330_v36 = vor.u32 %v329_v25, %v328_v22  ;;  %v333_v37 = vor.u32 %v332_v28, %v331_v26  ;;  %v336_v38 = vor.u32 %v335_v31, %v334_v29 }
  0xc9   : > { %v339_v39 = vor.u32 %v338_v34, %v337_v32 }
  0xca   : > { %v348_v41 = vsel %vm340_vm2, %v327_v35, %v330_v36  ;;  %v352_v42 = vsel %vm340_vm2, %v330_v36, %v333_v37  ;;  %v349_v43 = vsel %vm343_vm3, %v336_v38, 920167782  ;;  %v345_v10 = vsel %vm343_vm3, %v333_v37, 2102212464 }
  0xcb   : > { %v353_v44 = vsel %vm343_vm3, %v339_v39, 1326507024  ;;  %v350_v45 = vsel %vm342_vm4, %v333_v37, %v349_v43  ;;  %v344_v23 = vsel %vm340_vm2, %v324_v14, %v327_v35  ;;  %v346_v24 = vsel %vm342_vm4, %v330_v36, %v345_v10  ;;  %v468_v37 = vld [vmem:[#allocation7 + $0x18] sm:$0xff]  ;;  %v466_v39 = vld [vmem:[#allocation7 + $0x8] sm:$0xff] }
  0xcc   : > { %v354_v46 = vsel %vm342_vm4, %v336_v38, %v353_v44  ;;  %v351_v47 = vsel %vm341_vm5, %v348_v41, %v350_v45  ;;  %v347_v16 = vsel %vm341_vm5, %v344_v23, %v346_v24  ;;  %v467_v38 = vld [vmem:[#allocation7 + $0x10] sm:$0xff]  ;;  %488 = vmatpush.msra.mxu1 %v468_v37  ;;  %vm451_vm3 = vweird.f32 %v1022_v7 }
  0xcd   : > { %v355_v48 = vsel %vm341_vm5, %v352_v42, %v354_v46  ;;  %v381_v53 = vand.u32 65535, %v351_v47  ;;  %v382_v54 = vshrl.u32 %v351_v47, 16  ;;  %v401_v32 = vmul.u32 %v1039_v40, %v347_v16  ;;  %v465_v42 = vld [vmem:[#allocation7] sm:$0xff] }
  0xce   : > { %v359_v51 = vand.u32 65535, %v355_v48  ;;  %v360_v52 = vshrl.u32 %v355_v48, 16  ;;  %489 = vmatpush.msra.mxu1 %v467_v38 }
  0xcf   : > { %v384_v57 = vmul.u32 %v382_v54, %v357_v49  ;;  %v385_v58 = vmul.u32 %v381_v53, %v358_v50  ;;  %v383_v62 = vmul.u32 %v381_v53, %v357_v49  ;;  %v386_v2 = vmul.u32 %v382_v54, %v358_v50 }
  0xd0   : > { %v362_v55 = vmul.u32 %v360_v52, %v357_v49  ;;  %v363_v56 = vmul.u32 %v359_v51, %v358_v50  ;;  %v361_v59 = vmul.u32 %v359_v51, %v357_v49  ;;  %v364_v61 = vmul.u32 %v360_v52, %v358_v50  ;;  %490 = vmatpush.msra.mxu1 %v466_v39 }
  0xd1   : > { %v387_v63 = vshll.u32 %v384_v57, 16  ;;  %v389_v5 = vshll.u32 %v385_v58, 16  ;;  %v388_v21 = vshrl.u32 %v384_v57, 16  ;;  %v390_v27 = vshrl.u32 %v385_v58, 16 }
  0xd2   : > { %v365_v60 = vshll.u32 %v362_v55, 16  ;;  %v367_v0 = vshll.u32 %v363_v56, 16  ;;  %v366_v15 = vshrl.u32 %v362_v55, 16  ;;  %v368_v25 = vshrl.u32 %v363_v56, 16  ;;  %491 = vmatpush.msra.mxu1 %v465_v42 }
  0xd3   : > { %vm391_vm7 = vc.u32 %v383_v62, %v387_v63  ;;  %v393_v6 = vadd.s32 %v387_v63, %v383_v62 }
  0xd4   : > { %vm369_vm6 = vc.u32 %v361_v59, %v365_v60  ;;  %v371_v1 = vadd.s32 %v365_v60, %v361_v59  ;;  %v392_v9 = vsel %vm391_vm7, 1, %v873_v3 }
  0xd5   : > { %v370_v4 = vsel %vm369_vm6, 1, %v873_v3  ;;  %v394_v13 = vadd.s32 %v392_v9, %v386_v2  ;;  %vm395_vm9 = vc.u32 %v393_v6, %v389_v5  ;;  %v397_v30 = vadd.s32 %v393_v6, %v389_v5 }
  0xd6   : > { %v372_v8 = vadd.s32 %v370_v4, %v364_v61  ;;  %vm373_vm8 = vc.u32 %v371_v1, %v367_v0  ;;  %v396_v20 = vsel %vm395_vm9, 1, %v873_v3 }
  0xd7   : > { %v374_v12 = vsel %vm373_vm8, 1, %v873_v3  ;;  %v398_v22 = vadd.s32 %v396_v20, %v394_v13 }
  0xd8   : > { %v376_v17 = vadd.s32 %v374_v12, %v372_v8 }
  0xd9   : > { %v399_v28 = vadd.s32 %v398_v22, %v388_v21 }
  0xda   : > { %v377_v26 = vadd.s32 %v376_v17, %v366_v15 }
  0xdb   : > { %v400_v19 = vadd.s32 %v399_v28, %v390_v27 }
  0xdc   : > { %v378_v29 = vadd.s32 %v377_v26, %v368_v25 }
  0xdd   : > { %v404_v31 = vadd.s32 1, %v400_v19 }
  0xde   : > { %vm403_vm10 = vc.u32 %v378_v29, %v397_v30  ;;  %v402_v47 = vadd.s32 %v397_v30, %v378_v29  ;;  %v700_v29 = vld [vmem:[%s1121_s4] ss:$0 sm:$0xff] }
  0xdf   : > { %v405_v33 = vsel %vm403_vm10, %v404_v31, %v400_v19 }
  0xe0   : > { %v406_v34 = vadd.s32 %v405_v33, %v401_v32 }
  0xe2   : > { %v407_v35 = vadd.s32 536870912, %v406_v34 }
  0xe4   : > { %v408_v36 = vshrl.u32 %v407_v35, 30 }
  0xe6   : > { %v409_v41 = vshll.u32 %v408_v36, 30  ;;  %v432_v62 = vsub.s32 4, %v408_v36 }
  0xe8   : > { %v410_v43 = vsub.s32 %v406_v34, %v409_v41  ;;  %v433_v2 = vsel %vm310_vm13, %v432_v62, %v408_v36 }
  0xe9   : > { %v435_v5 = vsel %vm309_vm14, 0, %v433_v2 }
  0xea   : > { %vm411_vm11 = vcmp.lt.s32.totalorder %v410_v43, 0  ;;  %v412_v18 = vsub.s32 0, %v410_v43  ;;  %v452_v12 = vadd.s32 3, %v435_v5 }
  0xec   : > { %v413_v44 = vsel %vm411_vm11, %v412_v18, %v410_v43  ;;  %v453_v17 = vand.u32 3, %v452_v12 }
  0xed   : > { %v414_v45 = vclz %v413_v44 }
  0xee   : > { %vm455_vm15 = vcmp.eq.s32.totalorder %v453_v17, 0  ;;  %vm458_vm1 = vcmp.eq.s32.totalorder %v453_v17, 2  ;;  %vm454_vm2 = vcmp.lt.s32.totalorder %v453_v17, 2 }
  0xef   : > { %v616_v46 = vadd.s32 4294967294, %v414_v45 }
  0xf1   : > { %vm617_vm12 = vcmp.lt.s32.totalorder %v616_v46, 0 }
  0xf2   : > { %v417_v40 = vsel %vm617_vm12, 0, %v616_v46 }
  0xf3   : > { %v418_v48 = vsub.s32 32, %v417_v40  ;;  %v422_v49 = vsub.s32 4294967266, %v417_v40  ;;  %v419_v50 = vshll.u32 %v410_v43, %v417_v40 }
  0xf5   : > { %v420_v51 = vshrl.u32 %v402_v47, %v418_v48  ;;  %v423_v52 = vadd.s32 127, %v422_v49 }
  0xf7   : > { %v421_v53 = vor.u32 %v420_v51, %v419_v50  ;;  %v424_v54 = vshll.u32 %v423_v52, 23 }
  0xf9   : > { %v425_v55 = vor.u32 4788187, %v424_v54  ;;  %v428_v57 = vcvt.s32.f32 %v421_v53 }
  0xfb   : > { %v426_v56 = vand.u32 2147483647, %v425_v55 }
  0xfd   : > { %v429_v58 = vmul.f32 %v428_v57, %v426_v56 }
  0xff   : > { %v430_v59 = vxor.u32 2147483648, %v429_v58 }
 0x101   : > { %v431_v60 = vsel %vm310_vm13, %v430_v59, %v429_v58 }
 0x102   : > { %v434_v61 = vsel %vm309_vm14, %v1022_v7, %v431_v60 }
 0x103   : > { %v436_v63 = vmul.f32 %v434_v61, %v434_v61 }
 0x105   : > { %v437_v0 = vmul.f32 -0.001358992, %v436_v63  ;;  %v444_v1 = vmul.f32 -0.00019511016, %v436_v63 }
 0x107   : > { %v438_v3 = vadd.f32 0.041655596, %v437_v0  ;;  %v445_v4 = vadd.f32 0.008332121, %v444_v1 }
 0x109   : > { %v439_v6 = vmul.f32 %v438_v3, %v436_v63  ;;  %v446_v8 = vmul.f32 %v445_v4, %v436_v63 }
 0x10b   : > { %v440_v9 = vadd.f32 -0.4999988, %v439_v6  ;;  %v447_v10 = vadd.f32 -0.16666654, %v446_v8 }
 0x10d   : > { %v441_v13 = vmul.f32 %v440_v9, %v436_v63  ;;  %v448_v14 = vmul.f32 %v447_v10, %v436_v63 }
 0x10f   : > { %v442_v15 = vadd.f32 1.0, %v441_v13  ;;  %v449_v11 = vadd.f32 1.0, %v448_v14 }
 0x111   : > { %v450_v20 = vmul.f32 %v449_v11, %v434_v61  ;;  %v459_v21 = vxor.u32 2147483648, %v442_v15 }
 0x113   : > { %v456_v22 = vxor.u32 2147483648, %v450_v20  ;;  %v460_v24 = vsel %vm458_vm1, %v459_v21, %v450_v20 }
 0x115   : > { %v457_v23 = vsel %vm455_vm15, %v442_v15, %v456_v22 }
 0x116   : > { %v461_v25 = vsel %vm454_vm2, %v457_v23, %v460_v24 }
 0x117   : > { %v462_v26 = vsel %vm451_vm3, nan, %v461_v25 }
 0x118   : > { %v463_v27 = vmul.f32 0.1, %v462_v26 }
 0x11a   : > { %v464_v28 = vmax.f32 %v462_v26, %v463_v27 }
 0x11c   : > { %618 = vmatmul.msk.f32.vlgmr.msra.gmra.mxu1 %vm284_vm0, %v464_v28 }
 0x199   : > { %v493_v7 = vpop.f32.mrf.mxu1 }
 0x19a   : > { %v494_v30 = vadd.f32 %v700_v29, %v493_v7 }
 0x19c   : > { %496 = vst [vmem:[%s274_s28] sm:$0xff] %v494_v30 }
 0x19d   : > { %818 = shalt.err (!%p815_p9)
}
 0x19e   : > { %633 = dma.vmem_to_hbm [thread:$0]  (%p973_p4), %s511_s29, 128, %s513_s30, %s498_s16  }
 0x19f PF: > { %s524_s22 = sand.u32 1, %s849_s18   ;;  %p1129_p10 = scmp.ge.s32.totalorder %s861_s21, 2 }
 0x1a0   : > { %s525_s9 = scalar_lea.sflag [#allocation4], %s524_s22 }
 0x1a1   : > { %p647_p13 = pnand %p1129_p10, %p977_p6 }
 0x1a3   : > { %p648_p11 = pneg %p647_p13 }
 0x1a5   : > { %844 = dma.done.wait (%p648_p11), %s525_s9, 128  }
 0x1a6   : > { %846 = vsyncadd (%p648_p11), %s525_s9, 4294967168  ;;  %p19_p0 = scmp.ge.s32.totalorder %s947_s12, 4   ;;  %s1130_s18 = smov %s853_s19 }
 0x1a7   : > { %s1131_s19 = smov %s857_s20  ;;  %s1132_s20 = smov %s958_s15 }
 0x1a8   : > { %s1133_s21 = smov %s947_s12  ;;  %21 = sbr.rel (!%p19_p0) target bundleno = 6 (0x6), region = 93 }
 0x1ad   :  { %531 = vsyncpa [#allocation3], 1 }
 0x1ae   :  { %533 = vsyncpa [#allocation3 + $0x1], 1 }
 0x1af   :  { %534 = vsyncpa [#allocation6], 1 }
 0x1b0   :  { %535 = vsyncpa [#allocation4], 1 }
 0x1b1   :  { %537 = vsyncpa [#allocation4 + $0x1], 1 }

// kernel: tpu_custom_call.1
= control target key start
LH: loop header
LB: loop body
LE: loop exit
PB: predicated region body
PF: predicated region fallthrough
CT: control target
= control target key end

     0   :  { %10 = vsyncpa [#allocation3], 0  ;;  %s1117_s0 = inlined_call_operand.hbm [shape: f32[16,32], index: 0, kind: input, shape index: {}]   ;;  %s1118_s1 = inlined_call_operand.hbm [shape: f32[32,32], index: 1, kind: input, shape index: {}]   ;;  %s1119_s2 = inlined_call_operand.vmem [shape: f32[1,32], index: 2, kind: input, shape index: {}]   ;;  %s1120_s3 = inlined_call_operand.hbm [shape: f32[32,128], index: 3, kind: input, shape index: {}]   ;;  %s1121_s4 = inlined_call_operand.vmem [shape: f32[1,128], index: 4, kind: input, shape index: {}]   ;;  %s1122_s5 = inlined_call_operand.hbm [shape: f32[16,128], index: 5, kind: output, shape index: {}]  }
   0x1   :  { %12 = vsyncpa [#allocation3 + $0x1], 0 }
   0x2   :  { %13 = vsyncpa [#allocation6], 0 }
   0x3   :  { %14 = vsyncpa [#allocation4], 0 }
   0x4   :  { %16 = vsyncpa [#allocation4 + $0x1], 0  ;;  %s904_s18 = smov 0   ;;  %s906_s19 = smov 0  }
   0x5   :  { %s908_s20 = smov 0   ;;  %s910_s21 = smov 0  }
   0x6 LB: > { %s174_s24 = sshll.u32 %s1118_s1, 4  ;;  %s928_s25 = sadd.s32 4294967295, %s861_s21   ;;  %s861_s21 = sphi %s910_s21, %s1133_s21   ;;  %s857_s20 = sphi %s908_s20, %s1132_s20   ;;  %s853_s19 = sphi %s906_s19, %s1131_s19   ;;  %s849_s18 = sphi %s904_s18, %s1130_s18   ;;  %s175_s24 = int_to_ptr.hbm [resolvable:$true] %s174_s24 }
   0x7   : > { %p603_p0 = scmp.ge.s32.totalorder %s861_s21, 1  ;;  %p43_p1 = scmp.eq.s32.totalorder %s928_s25, 0 }
   0x8   : > { %p163_p2 = scmp.lt.s32.totalorder %s861_s21, 3  ;;  %s863_s27 = smov [#allocation5]  }
   0x9   : > { %s176_s28 = sshll.u32 %s863_s27, 4  ;;  %s191_s6 = sshll.u32 %s1120_s3, 4  ;;  %s177_s28 = int_to_ptr.vmem [resolvable:$true] %s176_s28  ;;  %s192_s6 = int_to_ptr.hbm [resolvable:$true] %s191_s6 }
   0xa   : > { %p933_p3 = pnand %p603_p0, %p163_p2  ;;  %s864_s7 = smov [#allocation7]  }
   0xb   : > { %s193_s8 = sshll.u32 %s864_s7, 4  ;;  %s865_s9 = smov 128   ;;  %s194_s8 = int_to_ptr.vmem [resolvable:$true] %s193_s8 }
   0xc   : > { %p635_p4 = pneg %p933_p3  ;;  %s866_s10 = smov 8  }
   0xd   : > { %s602_s11 = sadd.s32 4294967294, %s861_s21   ;;  %s947_s12 = sadd.s32 1, %s861_s21  }
   0xe   : > { %p636_p6 = pnand %p635_p4, %p43_p1  ;;  %s26_s13 = ssub.s32 %s861_s21, %s947_s12 }
   0xf   : > { %s29_s14 = sadd.s32 1, %s857_s20  ;;  %p27_p7 = scmp.eq.s32.totalorder %s26_s13, 0 }
  0x10   : > { %638 = dma.hbm_to_vmem [thread:$0]  (!%p636_p6), %s175_s24, 512, %s177_s28, [#allocation6], %s865_s9, %s865_s9, %s866_s10  }
  0x11   : > { %641 = dma.hbm_to_vmem [thread:$0]  (!%p636_p6), %s192_s6, 512, %s194_s8, [#allocation6], %s865_s9, %s865_s9, %s866_s10  }
  0x12   : > { %p36_p8 = scmp.ne.s32.totalorder %s857_s20, %s853_s19  ;;  %p37_p9 = scmp.eq.s32.totalorder %s861_s21, 0 }
  0x13   : > { %p42_p10 = scmp.ne.s32.totalorder %s853_s19, %s849_s18  ;;  %p150_p13 = scmp.eq.s32.totalorder %s928_s25, 1 }
  0x14   : > { %s958_s15 = scalar_select %p27_p7, %s857_s20, %s29_s14  }
  0x15   : > { %p960_p11 = por %p37_p9, %p36_p8  ;;  %p966_p12 = por %p43_p1, %p42_p10 }
  0x16   : > { %p156_p0 = scmp.eq.s32.totalorder %s602_s11, 1  ;;  %p652_p2 = scmp.lt.s32.totalorder %s861_s21, 2 }
  0x17   : > { %s210_s22 = sand.u32 1, %s857_s20   ;;  %p973_p4 = por %p150_p13, %p36_p8 }
  0x18   : > { %p977_p6 = por %p156_p0, %p42_p10  ;;  %s607_s27 = sshll.u32 %s210_s22, 3 }
  0x19   : > { %s608_s28 = sshll.u32 %s861_s21, 3  ;;  %s214_s7 = scalar_lea.vmem [#allocation2], %s607_s27 }
  0x1a   : > { %s218_s6 = scalar_lea.hbm %s1117_s0, %s608_s28  ;;  %s222_s8 = sshll.u32 %s214_s7, 4  ;;  %s223_s8 = int_to_ptr.vmem [resolvable:$true] %s222_s8 }
  0x1b   : > { %s220_s9 = sshll.u32 %s218_s6, 4  ;;  %p987_p7 = pnand %p652_p2, %p960_p11  ;;  %s221_s9 = int_to_ptr.hbm [resolvable:$true] %s220_s9 }
  0x1c   : > { %s211_s11 = scalar_lea.sflag [#allocation3], %s210_s22  ;;  %s761_s13 = sshra.s32 %s221_s9, 4  ;;  %s762_s13 = int_to_ptr.hbm [resolvable:$true] %s761_s13 }
  0x1d   : > { %s763_s14 = scalar_lea.hbm %s762_s13, 8  ;;  %p765_p9 = pneg %p987_p7 }
  0x1e   : > { %p764_p8 = scmp.ne.s32.totalorder %s762_s13, %s763_s14  ;;  %s768_s29 = scalar_lea.hbm %s1117_s0, 16 }
  0x1f   : > { %p769_p11 = scmp.lt.s32.totalorder %s762_s13, %s1117_s0  ;;  %p770_p0 = scmp.lt.s32.totalorder %s768_s29, %s763_s14 }
  0x20   : > { %p766_p10 = pnand %p765_p9, %p764_p8 }
  0x21   : > { %p771_p2 = por %p770_p0, %p769_p11 }
  0x22   : > { %p767_p13 = pneg %p766_p10 }
  0x24   : > { %p772_p5 = pnand %p771_p2, %p767_p13 }
  0x26   : > { %775 = shalt.err (!%p772_p5)
}
  0x27   : > { %645 = dma.hbm_to_vmem [thread:$0]  (!%p987_p7), %s221_s9, 128, %s223_s8, %s211_s11  }
  0x28   : > { %231 = sbr.rel (%p933_p3) target bundleno = 415 (0x19f), region = 40  ;;  %s1004_s22 = sand.u32 (!%p933_p3), 1, %s853_s19  }
  0x29   : > { %s610_s6 = sshll.u32 (!%p933_p3), %s1004_s22, 3  ;;  %s234_s7 = scalar_lea.sflag (!%p933_p3), [#allocation3], %s1004_s22 }
  0x2a   : > { %s237_s13 = scalar_lea.vmem (!%p933_p3), [#allocation2], %s610_s6 }
  0x2d   : > { %836 = dma.done.wait (%p966_p12), %s234_s7, 128  }
  0x2e   : > { %838 = vsyncadd (%p966_p12), %s234_s7, 4294967168 }
  0x2f   : > { %840 = dma.done.wait (%p43_p1), [#allocation6], 1024  }
  0x30   : > { %842 = vsyncadd (%p43_p1), [#allocation6], 4294966272  ;;  %v279_v0 = vld [vmem:[#allocation5 + $0x18] sm:$0xff]  ;;  %v278_v1 = vld [vmem:[#allocation5 + $0x10] sm:$0xff]  ;;  %vm284_vm0 = vcmask 261120   ;;  %s620_s8 = sshll.u32 %s928_s25, 3 }
  0x31   : > { %300 = vmatpush.msra.mxu0 %v279_v0  ;;  %v277_v2 = vld [vmem:[#allocation5 + $0x8] sm:$0xff]  ;;  %v276_v3 = vld [vmem:[#allocation5] sm:$0xff]  ;;  %v275_v4 = vld [vmem:[%s237_s13] sm:$0xff]  ;;  %v867_v19 = vmov 683565275   ;;  %s508_s11 = scalar_lea.hbm %s1122_s5, %s620_s8  ;;  %s274_s28 = scalar_lea.vmem [#allocation8], %s610_s6 }
  0x32   : > { %v699_v5 = vld [vmem:[%s1119_s2] ss:$0 sm:$0xff]  ;;  %v868_v21 = vmov 2475754826   ;;  %v869_v24 = vmov 2131351028  }
  0x33   : > { %301 = vmatpush.msra.mxu0 %v278_v1  ;;  %v870_v27 = vmov 2102212464   ;;  %v871_v30 = vmov 920167782   ;;  %v872_v33 = vmov 1326507024  }
  0x34   : > { %s510_s29 = sshll.u32 %s274_s28, 4  ;;  %s512_s30 = sshll.u32 %s508_s11, 4  ;;  %s511_s29 = int_to_ptr.vmem [resolvable:$true] %s510_s29  ;;  %s513_s30 = int_to_ptr.hbm [resolvable:$true] %s512_s30 }
  0x35   : > { %302 = vmatpush.msra.mxu0 %v277_v2  ;;  %s498_s16 = scalar_lea.sflag [#allocation4], %s1004_s22  ;;  %s805_s25 = sshra.s32 %s513_s30, 4  ;;  %s806_s25 = int_to_ptr.hbm [resolvable:$true] %s805_s25 }
  0x36   : > { %s807_s7 = scalar_lea.hbm %s806_s25, 8  ;;  %s811_s17 = scalar_lea.hbm %s1122_s5, 16 }
  0x37   : > { %303 = vmatpush.msra.mxu0 %v276_v3  ;;  %v873_v3 = vmov 0   ;;  %p808_p1 = scmp.ne.s32.totalorder %s806_s25, %s807_s7  ;;  %p812_p12 = scmp.lt.s32.totalorder %s806_s25, %s1122_s5 }
  0x38   : > { %614 = vmatmul.msk.f32.vlgmr.msra.gmra.mxu0 %vm284_vm0, %v275_v4  ;;  %p813_p7 = scmp.lt.s32.totalorder %s811_s17, %s807_s7 }
  0x39   : > { %p809_p3 = pnand %p808_p1, %p973_p4 }
  0x3a   : > { %p814_p8 = por %p813_p7, %p812_p12 }
  0x3b   : > { %p810_p5 = pneg %p809_p3 }
  0x3d   : > { %p815_p9 = pnand %p814_p8, %p810_p5 }
  0xb5   : > { %v305_v6 = vpop.f32.mrf.mxu0 }
  0xb6   : > { %v1022_v7 = vadd.f32 %v699_v5, %v305_v6 }
  0xb8   : > { %v311_v8 = vand.u32 2139095040, %v1022_v7  ;;  %v308_v11 = vand.u32 2147483647, %v1022_v7  ;;  %vm310_vm13 = vcmp.lt.s32.totalorder %v1022_v7, 0 }
  0xba   : > { %v312_v9 = vshrl.u32 %v311_v8, 23  ;;  %v315_v13 = vand.u32 8388607, %v308_v11  ;;  %vm309_vm14 = vcmp.le.f32.partialorder %v308_v11, 0.7853982 }
  0xbc   : > { %v615_v10 = vadd.s32 4294967169, %v312_v9  ;;  %v316_v17 = vor.u32 8388608, %v315_v13 }
  0xbe   : > { %v318_v12 = vadd.s32 1, %v615_v10  ;;  %v1039_v40 = vshll.u32 %v316_v17, 8 }
  0xc0   : > { %vm319_vm1 = vcmp.gt.s32.totalorder %v318_v12, 0  ;;  %v357_v49 = vand.u32 65535, %v1039_v40  ;;  %v358_v50 = vshrl.u32 %v1039_v40, 16 }
  0xc1   : > { %v320_v14 = vsel %vm319_vm1, %v318_v12, 0 }
  0xc2   : > { %v322_v15 = vand.u32 31, %v320_v14  ;;  %v1030_v18 = vshrl.u32 %v320_v14, 5 }
  0xc4   : > { %v1028_v16 = vsub.s32 32, %v322_v15  ;;  %v325_v20 = vshll.u32 %v867_v19, %v322_v15  ;;  %v328_v22 = vshll.u32 %v868_v21, %v322_v15  ;;  %v331_v26 = vshll.u32 %v869_v24, %v322_v15 }
  0xc5   : > { %v334_v29 = vshll.u32 %v870_v27, %v322_v15  ;;  %v337_v32 = vshll.u32 %v871_v30, %v322_v15  ;;  %vm340_vm2 = vcmp.lt.s32.totalorder %v1030_v18, 1  ;;  %vm343_vm3 = vcmp.lt.s32.totalorder %v1030_v18, 4 }
  0xc6   : > { %v326_v23 = vshrl.u32 %v868_v21, %v1028_v16  ;;  %v329_v25 = vshrl.u32 %v869_v24, %v1028_v16  ;;  %v332_v28 = vshrl.u32 %v870_v27, %v1028_v16  ;;  %v335_v31 = vshrl.u32 %v871_v30, %v1028_v16 }
  0xc7   : > { %v338_v34 = vshrl.u32 %v872_v33, %v1028_v16  ;;  %vm342_vm4 = vcmp.lt.s32.totalorder %v1030_v18, 3  ;;  %vm341_vm5 = vcmp.lt.s32.totalorder %v1030_v18, 2  ;;  %v324_v14 = vshrl.u32 %v867_v19, %v1028_v16 }
  0xc8   : > { %v327_v35 = vor.u32 %v326_v23, %v325_v20  ;;  %v330_v36 = vor.u32 %v329_v25, %v328_v22  ;;  %v333_v37 = vor.u32 %v332_v28, %v331_v26  ;;  %v336_v38 = vor.u32 %v335_v31, %v334_v29 }
  0xc9   : > { %v339_v39 = vor.u32 %v338_v34, %v337_v32 }
  0xca   : > { %v348_v41 = vsel %vm340_vm2, %v327_v35, %v330_v36  ;;  %v352_v42 = vsel %vm340_vm2, %v330_v36, %v333_v37  ;;  %v349_v43 = vsel %vm343_vm3, %v336_v38, 920167782  ;;  %v345_v10 = vsel %vm343_vm3, %v333_v37, 2102212464 }
  0xcb   : > { %v353_v44 = vsel %vm343_vm3, %v339_v39, 1326507024  ;;  %v350_v45 = vsel %vm342_vm4, %v333_v37, %v349_v43  ;;  %v344_v23 = vsel %vm340_vm2, %v324_v14, %v327_v35  ;;  %v346_v24 = vsel %vm342_vm4, %v330_v36, %v345_v10  ;;  %v468_v37 = vld [vmem:[#allocation7 + $0x18] sm:$0xff]  ;;  %v466_v39 = vld [vmem:[#allocation7 + $0x8] sm:$0xff] }
  0xcc   : > { %v354_v46 = vsel %vm342_vm4, %v336_v38, %v353_v44  ;;  %v351_v47 = vsel %vm341_vm5, %v348_v41, %v350_v45  ;;  %v347_v16 = vsel %vm341_vm5, %v344_v23, %v346_v24  ;;  %v467_v38 = vld [vmem:[#allocation7 + $0x10] sm:$0xff]  ;;  %488 = vmatpush.msra.mxu1 %v468_v37  ;;  %vm451_vm3 = vweird.f32 %v1022_v7 }
  0xcd   : > { %v355_v48 = vsel %vm341_vm5, %v352_v42, %v354_v46  ;;  %v381_v53 = vand.u32 65535, %v351_v47  ;;  %v382_v54 = vshrl.u32 %v351_v47, 16  ;;  %v401_v32 = vmul.u32 %v1039_v40, %v347_v16  ;;  %v465_v42 = vld [vmem:[#allocation7] sm:$0xff] }
  0xce   : > { %v359_v51 = vand.u32 65535, %v355_v48  ;;  %v360_v52 = vshrl.u32 %v355_v48, 16  ;;  %489 = vmatpush.msra.mxu1 %v467_v38 }
  0xcf   : > { %v384_v57 = vmul.u32 %v382_v54, %v357_v49  ;;  %v385_v58 = vmul.u32 %v381_v53, %v358_v50  ;;  %v383_v62 = vmul.u32 %v381_v53, %v357_v49  ;;  %v386_v2 = vmul.u32 %v382_v54, %v358_v50 }
  0xd0   : > { %v362_v55 = vmul.u32 %v360_v52, %v357_v49  ;;  %v363_v56 = vmul.u32 %v359_v51, %v358_v50  ;;  %v361_v59 = vmul.u32 %v359_v51, %v357_v49  ;;  %v364_v61 = vmul.u32 %v360_v52, %v358_v50  ;;  %490 = vmatpush.msra.mxu1 %v466_v39 }
  0xd1   : > { %v387_v63 = vshll.u32 %v384_v57, 16  ;;  %v389_v5 = vshll.u32 %v385_v58, 16  ;;  %v388_v21 = vshrl.u32 %v384_v57, 16  ;;  %v390_v27 = vshrl.u32 %v385_v58, 16 }
  0xd2   : > { %v365_v60 = vshll.u32 %v362_v55, 16  ;;  %v367_v0 = vshll.u32 %v363_v56, 16  ;;  %v366_v15 = vshrl.u32 %v362_v55, 16  ;;  %v368_v25 = vshrl.u32 %v363_v56, 16  ;;  %491 = vmatpush.msra.mxu1 %v465_v42 }
  0xd3   : > { %vm391_vm7 = vc.u32 %v383_v62, %v387_v63  ;;  %v393_v6 = vadd.s32 %v387_v63, %v383_v62 }
  0xd4   : > { %vm369_vm6 = vc.u32 %v361_v59, %v365_v60  ;;  %v371_v1 = vadd.s32 %v365_v60, %v361_v59  ;;  %v392_v9 = vsel %vm391_vm7, 1, %v873_v3 }
  0xd5   : > { %v370_v4 = vsel %vm369_vm6, 1, %v873_v3  ;;  %v394_v13 = vadd.s32 %v392_v9, %v386_v2  ;;  %vm395_vm9 = vc.u32 %v393_v6, %v389_v5  ;;  %v397_v30 = vadd.s32 %v393_v6, %v389_v5 }
  0xd6   : > { %v372_v8 = vadd.s32 %v370_v4, %v364_v61  ;;  %vm373_vm8 = vc.u32 %v371_v1, %v367_v0  ;;  %v396_v20 = vsel %vm395_vm9, 1, %v873_v3 }
  0xd7   : > { %v374_v12 = vsel %vm373_vm8, 1, %v873_v3  ;;  %v398_v22 = vadd.s32 %v396_v20, %v394_v13 }
  0xd8   : > { %v376_v17 = vadd.s32 %v374_v12, %v372_v8 }
  0xd9   : > { %v399_v28 = vadd.s32 %v398_v22, %v388_v21 }
  0xda   : > { %v377_v26 = vadd.s32 %v376_v17, %v366_v15 }
  0xdb   : > { %v400_v19 = vadd.s32 %v399_v28, %v390_v27 }
  0xdc   : > { %v378_v29 = vadd.s32 %v377_v26, %v368_v25 }
  0xdd   : > { %v404_v31 = vadd.s32 1, %v400_v19 }
  0xde   : > { %vm403_vm10 = vc.u32 %v378_v29, %v397_v30  ;;  %v402_v47 = vadd.s32 %v397_v30, %v378_v29  ;;  %v700_v29 = vld [vmem:[%s1121_s4] ss:$0 sm:$0xff] }
  0xdf   : > { %v405_v33 = vsel %vm403_vm10, %v404_v31, %v400_v19 }
  0xe0   : > { %v406_v34 = vadd.s32 %v405_v33, %v401_v32 }
  0xe2   : > { %v407_v35 = vadd.s32 536870912, %v406_v34 }
  0xe4   : > { %v408_v36 = vshrl.u32 %v407_v35, 30 }
  0xe6   : > { %v409_v41 = vshll.u32 %v408_v36, 30  ;;  %v432_v62 = vsub.s32 4, %v408_v36 }
  0xe8   : > { %v410_v43 = vsub.s32 %v406_v34, %v409_v41  ;;  %v433_v2 = vsel %vm310_vm13, %v432_v62, %v408_v36 }
  0xe9   : > { %v435_v5 = vsel %vm309_vm14, 0, %v433_v2 }
  0xea   : > { %vm411_vm11 = vcmp.lt.s32.totalorder %v410_v43, 0  ;;  %v412_v18 = vsub.s32 0, %v410_v43  ;;  %v452_v12 = vadd.s32 3, %v435_v5 }
  0xec   : > { %v413_v44 = vsel %vm411_vm11, %v412_v18, %v410_v43  ;;  %v453_v17 = vand.u32 3, %v452_v12 }
  0xed   : > { %v414_v45 = vclz %v413_v44 }
  0xee   : > { %vm455_vm15 = vcmp.eq.s32.totalorder %v453_v17, 0  ;;  %vm458_vm1 = vcmp.eq.s32.totalorder %v453_v17, 2  ;;  %vm454_vm2 = vcmp.lt.s32.totalorder %v453_v17, 2 }
  0xef   : > { %v616_v46 = vadd.s32 4294967294, %v414_v45 }
  0xf1   : > { %vm617_vm12 = vcmp.lt.s32.totalorder %v616_v46, 0 }
  0xf2   : > { %v417_v40 = vsel %vm617_vm12, 0, %v616_v46 }
  0xf3   : > { %v418_v48 = vsub.s32 32, %v417_v40  ;;  %v422_v49 = vsub.s32 4294967266, %v417_v40  ;;  %v419_v50 = vshll.u32 %v410_v43, %v417_v40 }
  0xf5   : > { %v420_v51 = vshrl.u32 %v402_v47, %v418_v48  ;;  %v423_v52 = vadd.s32 127, %v422_v49 }
  0xf7   : > { %v421_v53 = vor.u32 %v420_v51, %v419_v50  ;;  %v424_v54 = vshll.u32 %v423_v52, 23 }
  0xf9   : > { %v425_v55 = vor.u32 4788187, %v424_v54  ;;  %v428_v57 = vcvt.s32.f32 %v421_v53 }
  0xfb   : > { %v426_v56 = vand.u32 2147483647, %v425_v55 }
  0xfd   : > { %v429_v58 = vmul.f32 %v428_v57, %v426_v56 }
  0xff   : > { %v430_v59 = vxor.u32 2147483648, %v429_v58 }
 0x101   : > { %v431_v60 = vsel %vm310_vm13, %v430_v59, %v429_v58 }
 0x102   : > { %v434_v61 = vsel %vm309_vm14, %v1022_v7, %v431_v60 }
 0x103   : > { %v436_v63 = vmul.f32 %v434_v61, %v434_v61 }
 0x105   : > { %v437_v0 = vmul.f32 -0.001358992, %v436_v63  ;;  %v444_v1 = vmul.f32 -0.00019511016, %v436_v63 }
 0x107   : > { %v438_v3 = vadd.f32 0.041655596, %v437_v0  ;;  %v445_v4 = vadd.f32 0.008332121, %v444_v1 }
 0x109   : > { %v439_v6 = vmul.f32 %v438_v3, %v436_v63  ;;  %v446_v8 = vmul.f32 %v445_v4, %v436_v63 }
 0x10b   : > { %v440_v9 = vadd.f32 -0.4999988, %v439_v6  ;;  %v447_v10 = vadd.f32 -0.16666654, %v446_v8 }
 0x10d   : > { %v441_v13 = vmul.f32 %v440_v9, %v436_v63  ;;  %v448_v14 = vmul.f32 %v447_v10, %v436_v63 }
 0x10f   : > { %v442_v15 = vadd.f32 1.0, %v441_v13  ;;  %v449_v11 = vadd.f32 1.0, %v448_v14 }
 0x111   : > { %v450_v20 = vmul.f32 %v449_v11, %v434_v61  ;;  %v459_v21 = vxor.u32 2147483648, %v442_v15 }
 0x113   : > { %v456_v22 = vxor.u32 2147483648, %v450_v20  ;;  %v460_v24 = vsel %vm458_vm1, %v459_v21, %v450_v20 }
 0x115   : > { %v457_v23 = vsel %vm455_vm15, %v442_v15, %v456_v22 }
 0x116   : > { %v461_v25 = vsel %vm454_vm2, %v457_v23, %v460_v24 }
 0x117   : > { %v462_v26 = vsel %vm451_vm3, nan, %v461_v25 }
 0x118   : > { %v463_v27 = vmul.f32 0.1, %v462_v26 }
 0x11a   : > { %v464_v28 = vmax.f32 %v462_v26, %v463_v27 }
 0x11c   : > { %618 = vmatmul.msk.f32.vlgmr.msra.gmra.mxu1 %vm284_vm0, %v464_v28 }
 0x199   : > { %v493_v7 = vpop.f32.mrf.mxu1 }
 0x19a   : > { %v494_v30 = vadd.f32 %v700_v29, %v493_v7 }
 0x19c   : > { %496 = vst [vmem:[%s274_s28] sm:$0xff] %v494_v30 }
 0x19d   : > { %818 = shalt.err (!%p815_p9)
}
 0x19e   : > { %633 = dma.vmem_to_hbm [thread:$0]  (%p973_p4), %s511_s29, 128, %s513_s30, %s498_s16  }
 0x19f PF: > { %s524_s22 = sand.u32 1, %s849_s18   ;;  %p1129_p10 = scmp.ge.s32.totalorder %s861_s21, 2 }
 0x1a0   : > { %s525_s9 = scalar_lea.sflag [#allocation4], %s524_s22 }
 0x1a1   : > { %p647_p13 = pnand %p1129_p10, %p977_p6 }
 0x1a3   : > { %p648_p11 = pneg %p647_p13 }
 0x1a5   : > { %844 = dma.done.wait (%p648_p11), %s525_s9, 128  }
 0x1a6   : > { %846 = vsyncadd (%p648_p11), %s525_s9, 4294967168  ;;  %p19_p0 = scmp.ge.s32.totalorder %s947_s12, 4   ;;  %s1130_s18 = smov %s853_s19 }
 0x1a7   : > { %s1131_s19 = smov %s857_s20  ;;  %s1132_s20 = smov %s958_s15 }
 0x1a8   : > { %s1133_s21 = smov %s947_s12  ;;  %21 = sbr.rel (!%p19_p0) target bundleno = 6 (0x6), region = 93 }
 0x1ad   :  { %531 = vsyncpa [#allocation3], 1 }
 0x1ae   :  { %533 = vsyncpa [#allocation3 + $0x1], 1 }
 0x1af   :  { %534 = vsyncpa [#allocation6], 1 }
 0x1b0   :  { %535 = vsyncpa [#allocation4], 1 }
 0x1b1   :  { %537 = vsyncpa [#allocation4 + $0x1], 1 }

</bundles_post_ra>
